<compile_context>
chip_gen: v7x
topology: tpu7x:2x2x1
jax: 0.10.0
libtpu: 0.0.40
codegen_flags: <defaults>
</compile_context>

<pallas_src>
import math

import jax
import jax.numpy as jnp
from jax.experimental import pallas as pl
from jax.experimental.pallas import tpu as pltpu

# ---- model configuration (small, consistent with the module's __init__) ----
B = 2            # batch
N_LAYERS = 4     # number of hooked ln_2 modules (transformer blocks)
WIDTH = 32       # backbone[1] (CLIP visual width)
PROJ_DIM = 32    # proj_dim
NPROJ = 2        # nproj (structure hard-coded: 2 Linear+ReLU blocks)
N_STEPS = 3      # flow steps
IMG = (B, 3, 16, 16)       # NCHW image input to FlowModel.forward
IMG_FLAT = 3 * 16 * 16     # 768
LP = N_LAYERS * PROJ_DIM   # 128

_LOG_2PI = math.log(2.0 * math.pi)


def flow_model_kernel(x_ref, w0_ref, w1_ref, sum_ref, sp_ref, out_ref):
    """Fused FlowModel forward (single program, everything VMEM-resident).

    x:(B, 768) bf16   w0:(768, L*P) bf16   w1:(L*P, L*P) bf16   sum:(L*P, P) bf16
    sp:(4, L*P) f32 packed rows = [b0_blk ; b1_blk ; flow_shift(pad) ; const(pad)]
    out:(1, B) f32
    """
    b0 = sp_ref[0:1, :]                       # (1, L*P)
    b1 = sp_ref[1:2, :]                       # (1, L*P)
    ft = sp_ref[2:3, 0:PROJ_DIM]              # (1, P)
    const = sp_ref[3:4, 0:1]                  # (1, 1)

    # CLIP projection + first Linear folded into one bf16 MXU dot (f32 accum).
    h = jnp.maximum(
        jnp.dot(x_ref[...], w0_ref[...], preferred_element_type=jnp.float32) + b0,
        0.0)                                                              # (B, L*P)
    # second Linear+ReLU (block-diagonal over the hooked-layer axis)
    h = jnp.maximum(
        jnp.dot(h.astype(w1_ref.dtype), w1_ref[...],
                preferred_element_type=jnp.float32) + b1,
        0.0)                                                              # (B, L*P)

    # .sum(axis=1) over layers AND the folded flow scale in one MXU dot
    # (sum_ref = stacked identities * flow_scale), then the folded flow shift.
    z = jnp.dot(h.astype(sum_ref.dtype), sum_ref[...],
                preferred_element_type=jnp.float32) - ft                  # (B, P)

    ss = jnp.sum(z * z, axis=-1)                                          # (B,)
    out_ref[...] = ((-0.5 * ss)[None, :] + const).astype(out_ref.dtype)   # (1, B)


def _vmem():
    return pl.BlockSpec(memory_space=pltpu.MemorySpace.VMEM)


def clip_flow_forward(x, fused):
    """Full FlowModel.forward: one pallas_call, log-prob per batch element (B,)."""
    x_flat = x.reshape(B, IMG_FLAT).astype(jnp.bfloat16)
    out = pl.pallas_call(
        flow_model_kernel,
        out_shape=jax.ShapeDtypeStruct((1, B), jnp.float32),
        in_specs=[_vmem()] * 5,
        out_specs=_vmem(),
    )(x_flat, fused['w0'], fused['w1'], fused['sum'], fused['small'])
    return out[0]


def fold_params(params, clip_proj):
    """Data-independent precomputation done once at parameter load time:
    clip_proj folded into the first Linear, block-diagonal proj weights,
    layer-sum matrix with the flow scale folded into its columns, the N_STEPS
    flow affines folded into (scale, shift, const), small params packed into a
    single blob, and all matmul operands cast to bf16."""
    eye_l = jnp.eye(N_LAYERS, dtype=jnp.float32)
    w0_blk = jnp.kron(eye_l, params['w0'])                        # (L*W, L*P)
    w1_blk = jnp.kron(eye_l, params['w1'])                        # (L*P, L*P)
    # Fold the (synthetic) CLIP projection into the first Linear — exact
    # (matmul associativity); removes one matmul + one weight input in-kernel.
    w0_fused = clip_proj @ w0_blk                                  # (768, L*P)

    b0_blk = jnp.tile(params['b0'], (1, N_LAYERS))                # (1, L*P)
    b1_blk = jnp.tile(params['b1'], (1, N_LAYERS))                # (1, L*P)

    s, t = params['flow_s'], params['flow_t']                     # (N_STEPS, P)
    suffix = jnp.cumsum(s[::-1], axis=0)[::-1]                    # suffix[k] = sum_{j>=k} s_j
    scale = jnp.exp(-suffix[0:1])                                 # (1, P) = exp(-sum_k s_k)
    shift = jnp.sum(t * jnp.exp(-suffix), axis=0, keepdims=True)  # (1, P)
    logdet = -jnp.sum(s)
    const = logdet - 0.5 * PROJ_DIM * _LOG_2PI

    # layer-sum matrix (stacked identities) with the flow scale folded in.
    sum_mat = jnp.tile(jnp.eye(PROJ_DIM, dtype=jnp.float32), (N_LAYERS, 1)) * scale

    # Pack the sub-KB parameters into one (4, L*P) f32 blob -> one DMA, not 4.
    small = jnp.zeros((4, LP), jnp.float32)
    small = small.at[0, :].set(b0_blk[0])
    small = small.at[1, :].set(b1_blk[0])
    small = small.at[2, :PROJ_DIM].set(shift[0])
    small = small.at[3, 0].set(const)

    return {'w0': w0_fused.astype(jnp.bfloat16),
            'w1': w1_blk.astype(jnp.bfloat16),
            'sum': sum_mat.astype(jnp.bfloat16),
            'small': small}


def init_params(key):
    ks = jax.random.split(key, 8)
    lim0 = 1.0 / math.sqrt(WIDTH)
    lim1 = 1.0 / math.sqrt(PROJ_DIM)
    params = {
        'w0': jax.random.uniform(ks[0], (WIDTH, PROJ_DIM), jnp.float32, -lim0, lim0),
        'b0': jax.random.uniform(ks[1], (1, PROJ_DIM), jnp.float32, -lim0, lim0),
        'w1': jax.random.uniform(ks[2], (PROJ_DIM, PROJ_DIM), jnp.float32, -lim1, lim1),
        'b1': jax.random.uniform(ks[3], (1, PROJ_DIM), jnp.float32, -lim1, lim1),
        'flow_s': 0.1 * jax.random.normal(ks[4], (N_STEPS, PROJ_DIM), jnp.float32),
        'flow_t': 0.1 * jax.random.normal(ks[5], (N_STEPS, PROJ_DIM), jnp.float32),
    }
    clip_proj = 0.02 * jax.random.normal(ks[6], (IMG_FLAT, N_LAYERS * WIDTH), jnp.float32)
    return params, clip_proj


def reference_forward(x, clip_proj, params):
    """Pure-JAX f32 reference mirroring the PyTorch forward (unfused, per-step flow)."""
    x_flat = x.reshape(B, -1).astype(jnp.float32)
    g = (x_flat @ clip_proj).reshape(B, N_LAYERS, WIDTH)
    h = jnp.maximum(jnp.einsum('blw,wp->blp', g, params['w0']) + params['b0'], 0.0)
    h = jnp.maximum(jnp.einsum('blp,pq->blq', h, params['w1']) + params['b1'], 0.0)
    feat = h.sum(axis=1)
    z = feat
    logdet = 0.0
    for k in range(N_STEPS):
        z = (z - params['flow_t'][k]) * jnp.exp(-params['flow_s'][k])
        logdet = logdet - jnp.sum(params['flow_s'][k])
    return -0.5 * jnp.sum(z * z, axis=-1) - 0.5 * PROJ_DIM * _LOG_2PI + logdet


if __name__ == "__main__":
    key = jax.random.PRNGKey(0)
    k_x, k_p = jax.random.split(key)
    x = jax.random.normal(k_x, IMG, jnp.float32)          # (2, 3, 16, 16) NCHW image
    params, clip_proj = init_params(k_p)
    fused = fold_params(params, clip_proj)

    p = clip_flow_forward(x, fused)
    p = jax.block_until_ready(p)

    p_ref = reference_forward(x, clip_proj, params)
    assert p.shape == (B,)
    # Tolerance covers bf16 operand rounding (f32 accumulation) on the K=768
    # folded projection; structural errors would be orders of magnitude larger.
    assert jnp.allclose(p, p_ref, rtol=2e-2, atol=5e-2), (p, p_ref)
    print("KERNEL_OK")
</pallas_src>

<mosaic_0001>
module attributes {stable_mosaic.version = 11 : i64} {
  func.func @flow_model_kernel(%arg0: memref<2x768xbf16, #tpu.memory_space<vmem>>, %arg1: memref<768x128xbf16, #tpu.memory_space<vmem>>, %arg2: memref<128x128xbf16, #tpu.memory_space<vmem>>, %arg3: memref<128x32xbf16, #tpu.memory_space<vmem>>, %arg4: memref<4x128xf32, #tpu.memory_space<vmem>>, %arg5: memref<1x2xf32, #tpu.memory_space<vmem>>) attributes {dimension_semantics = [], scalar_prefetch = 0 : i64, scratch_operands = 0 : i64, tpu.core_type = #tpu.core_type<tc>} {
    %c0 = arith.constant 0 : index
    %c0_0 = arith.constant 0 : index
    %0 = vector.load %arg4[%c0, %c0_0] : memref<4x128xf32, #tpu.memory_space<vmem>>, vector<1x128xf32>
    %c1 = arith.constant 1 : index
    %c0_1 = arith.constant 0 : index
    %1 = vector.load %arg4[%c1, %c0_1] : memref<4x128xf32, #tpu.memory_space<vmem>>, vector<1x128xf32>
    %c2 = arith.constant 2 : index
    %c0_2 = arith.constant 0 : index
    %2 = vector.load %arg4[%c2, %c0_2] : memref<4x128xf32, #tpu.memory_space<vmem>>, vector<1x32xf32>
    %c3 = arith.constant 3 : index
    %c0_3 = arith.constant 0 : index
    %3 = vector.load %arg4[%c3, %c0_3] : memref<4x128xf32, #tpu.memory_space<vmem>>, vector<1x1xf32>
    %c0_4 = arith.constant 0 : index
    %c0_5 = arith.constant 0 : index
    %4 = vector.load %arg0[%c0_4, %c0_5] : memref<2x768xbf16, #tpu.memory_space<vmem>>, vector<2x768xbf16>
    %c0_6 = arith.constant 0 : index
    %c0_7 = arith.constant 0 : index
    %5 = vector.load %arg1[%c0_6, %c0_7] : memref<768x128xbf16, #tpu.memory_space<vmem>>, vector<768x128xbf16>
    %cst = arith.constant dense<0.000000e+00> : vector<2x128xf32>
    %6 = tpu.matmul %4, %5, %cst {dimension_numbers = #tpu.dot_dimension_numbers<[1], [0], [0], [1], [0, 0, 1, 1], [], []>} : vector<2x768xbf16>, vector<768x128xbf16>, vector<2x128xf32> -> vector<2x128xf32>
    %7 = vector.broadcast %0 : vector<1x128xf32> to vector<2x128xf32>
    %8 = arith.addf %6, %7 : vector<2x128xf32>
    %cst_8 = arith.constant 0.000000e+00 : f32
    %9 = vector.broadcast %cst_8 : f32 to vector<2x128xf32>
    %10 = arith.maximumf %8, %9 : vector<2x128xf32>
    %11 = arith.truncf %10 : vector<2x128xf32> to vector<2x128xbf16>
    %c0_9 = arith.constant 0 : index
    %c0_10 = arith.constant 0 : index
    %12 = vector.load %arg2[%c0_9, %c0_10] : memref<128x128xbf16, #tpu.memory_space<vmem>>, vector<128x128xbf16>
    %cst_11 = arith.constant dense<0.000000e+00> : vector<2x128xf32>
    %13 = tpu.matmul %11, %12, %cst_11 {dimension_numbers = #tpu.dot_dimension_numbers<[1], [0], [0], [1], [0, 0, 1, 1], [], []>} : vector<2x128xbf16>, vector<128x128xbf16>, vector<2x128xf32> -> vector<2x128xf32>
    %14 = vector.broadcast %1 : vector<1x128xf32> to vector<2x128xf32>
    %15 = arith.addf %13, %14 : vector<2x128xf32>
    %cst_12 = arith.constant 0.000000e+00 : f32
    %16 = vector.broadcast %cst_12 : f32 to vector<2x128xf32>
    %17 = arith.maximumf %15, %16 : vector<2x128xf32>
    %18 = arith.truncf %17 : vector<2x128xf32> to vector<2x128xbf16>
    %c0_13 = arith.constant 0 : index
    %c0_14 = arith.constant 0 : index
    %19 = vector.load %arg3[%c0_13, %c0_14] : memref<128x32xbf16, #tpu.memory_space<vmem>>, vector<128x32xbf16>
    %cst_15 = arith.constant dense<0.000000e+00> : vector<2x32xf32>
    %20 = tpu.matmul %18, %19, %cst_15 {dimension_numbers = #tpu.dot_dimension_numbers<[1], [0], [0], [1], [0, 0, 1, 1], [], []>} : vector<2x128xbf16>, vector<128x32xbf16>, vector<2x32xf32> -> vector<2x32xf32>
    %21 = vector.broadcast %2 : vector<1x32xf32> to vector<2x32xf32>
    %22 = arith.subf %20, %21 : vector<2x32xf32>
    %23 = arith.mulf %22, %22 : vector<2x32xf32>
    %cst_16 = arith.constant dense<0.000000e+00> : vector<2xf32>
    %24 = vector.multi_reduction <add>, %23, %cst_16 [1] : vector<2x32xf32> to vector<2xf32>
    %cst_17 = arith.constant -5.000000e-01 : f32
    %25 = vector.broadcast %cst_17 : f32 to vector<2xf32>
    %26 = arith.mulf %25, %24 : vector<2xf32>
    %27 = vector.shape_cast %26 : vector<2xf32> to vector<1x2xf32>
    %28 = vector.broadcast %3 : vector<1x1xf32> to vector<1x2xf32>
    %29 = arith.addf %27, %28 : vector<1x2xf32>
    %c0_18 = arith.constant 0 : index
    %c0_19 = arith.constant 0 : index
    %30 = vector.load %arg5[%c0_18, %c0_19] : memref<1x2xf32, #tpu.memory_space<vmem>>, vector<1x2xf32>
    tpu.vector_store %arg5[%c0_18, %c0_19], %29 {strides = array<i32>} : memref<1x2xf32, #tpu.memory_space<vmem>>, vector<1x2xf32>,
    return
  }
}

</mosaic_0001>

<bundles_post_ra>
// kernel: tpu_custom_call.1
= control target key start
LH: loop header
LB: loop body
LE: loop exit
PB: predicated region body
PF: predicated region fallthrough
CT: control target
= control target key end

     0   :  { %10 = vsyncpa [#allocation3], 0  ;;  %s1332_s0 = inlined_call_operand.vmem [shape: bf16[2,768], index: 0, kind: input, shape index: {}]   ;;  %s1333_s1 = inlined_call_operand.hbm [shape: bf16[768,128], index: 1, kind: input, shape index: {}]   ;;  %s1334_s2 = inlined_call_operand.vmem [shape: bf16[128,128], index: 2, kind: input, shape index: {}]   ;;  %s1335_s3 = inlined_call_operand.vmem [shape: bf16[128,32], index: 3, kind: input, shape index: {}]   ;;  %s1336_s4 = inlined_call_operand.vmem [shape: f32[4,128], index: 4, kind: input, shape index: {}]   ;;  %s1337_s5 = inlined_call_operand.hbm [shape: f32[1,2], index: 5, kind: output, shape index: {}]  }
   0x1   :  { %11 = vsyncpa [#allocation4], 0  ;;  %s1182_s18 = smov [#allocation2]   ;;  %s1134_s22 = scalar_lea.hbm %s1333_s1, 6144 }
   0x2   :  { %s19_s19 = sshll.u32 %s1182_s18, 4  ;;  %p1135_p0 = scmp.ne.s32.totalorder %s1333_s1, %s1134_s22  ;;  %s20_s19 = int_to_ptr.vmem [resolvable:$true] %s19_s19 }
   0x3   :  { %p1138_p1 = scmp.lt.u32.totalorder %s1134_s22, %s1333_s1 }
   0x5   :  { %p1140_p2 = pnand %p1138_p1, %p1135_p0 }
   0x7   :  { %1143 = shalt.err (!%p1140_p2)
}
   0x8   :  { %s1144_s27 = scalar_lea.vmem %s20_s19, 6144  ;;  %p1149_p4 = scmp.lt.s32.totalorder %s20_s19, %s20_s19 }
   0x9   :  { %p1145_p3 = scmp.ne.s32.totalorder %s20_s19, %s1144_s27  ;;  %p1150_p5 = scmp.lt.s32.totalorder %s1144_s27, %s1144_s27 }
   0xb   :  { %p1151_p6 = por %p1150_p5, %p1149_p4 }
   0xd   :  { %p1152_p7 = pnand %p1151_p6, %p1145_p3 }
   0xf   :  { %1155 = shalt.err (!%p1152_p7)
}
  0x10   :  { %s1183_s28 = smov 64   ;;  %s1184_s29 = smov 4  }
  0x11   :  { %25 = dma.hbm_to_vmem [thread:$0]  %s1333_s1, 6144, %s20_s19, [#allocation3], %s1183_s28, %s1183_s28, %s1184_s29  }
  0x12   :  { %1178 = dma.done.wait [#allocation3], 6144  }
  0x13   :  { %1179 = vsyncadd [#allocation3], 4294961152  ;;  %v1069_v0 = vld [vmem:[#allocation2 + $0x40] sm:$0xff]   ;;  %v1073_v4 = vld [vmem:[#allocation2 + $0x48] sm:$0xff]   ;;  %v1185_v21 = vmov 1966171168   ;;  %v146_v23 = vlaneseq }
  0x14   :  { %v1070_v1 = vld [vmem:[#allocation2] sm:$0xff]   ;;  %935 = vmatprep.subr.bf16.mxu0 %v1069_v0  ;;  %v1074_v5 = vld [vmem:[#allocation2 + $0x8] sm:$0xff]   ;;  %v1077_v8 = vld [vmem:[#allocation2 + $0x50] sm:$0xff]   ;;  %v144_v22 = vunpack.c.l.s4 %v1185_v21  ;;  %vm1187_vm0 = vmmov 0   ;;  %vm825_vm1 = vcmask 254976   ;;  %s1189_s18 = smov [#allocation5]  }
  0x15   :  { %v1071_v2 = vld [vmem:[#allocation2 + $0xc0] sm:$0xff]   ;;  %936 = vmatpush3.bf16.msra.mxu0 %v1070_v1  ;;  %v1075_v6 = vld [vmem:[#allocation2 + $0xc8] sm:$0xff]   ;;  %v1078_v9 = vld [vmem:[#allocation2 + $0x10] sm:$0xff]   ;;  %v1233_v29 = vshrl.u32 %v146_v23, 7  ;;  %s859_s19 = sshll.u32 %s1189_s18, 4  ;;  %vm851_vm2 = vcmask 8192   ;;  %s860_s19 = int_to_ptr.vmem [resolvable:$true] %s859_s19 }
  0x16   :  { %v1072_v3 = vld [vmem:[#allocation2 + $0x80] sm:$0xff]   ;;  %957 = vmatprep.subr.bf16.mxu1 %v1071_v2  ;;  %937 = vmatprep.subr.bf16.mxu0 %v1073_v4  ;;  %v1076_v7 = vld [vmem:[#allocation2 + $0x88] sm:$0xff]   ;;  %v1079_v10 = vld [vmem:[#allocation2 + $0xd0] sm:$0xff]   ;;  %v145_v28 = vunpack.c.0.s8 %v144_v22  ;;  %s1160_s20 = scalar_lea.vmem %s860_s19, 32  ;;  %p1161_p9 = scmp.lt.s32.totalorder %s860_s19, %s860_s19 }
  0x17   :  { %958 = vmatpush3.bf16.msra.mxu1 %v1072_v3  ;;  %v1080_v11 = vld [vmem:[#allocation2 + $0x90] sm:$0xff]   ;;  %v1081_v12 = vld [vmem:[#allocation2 + $0x58] sm:$0xff]   ;;  %v1085_v16 = vld [vmem:[#allocation2 + $0x60] sm:$0xff]   ;;  %v1186_v3 = vmov 0.0  }
  0x18   :  { %959 = vmatprep.subr.bf16.mxu1 %v1075_v6  ;;  %v1082_v13 = vld [vmem:[#allocation2 + $0x18] sm:$0xff]   ;;  %v1086_v17 = vld [vmem:[#allocation2 + $0x20] sm:$0xff]   ;;  %v1089_v20 = vld [vmem:[#allocation2 + $0x68] sm:$0xff]   ;;  %v148_v34 = vsub.s32 %v145_v28, %v1233_v29 }
  0x19   :  { %938 = vmatpush3.bf16.msra.mxu0 %v1074_v5  ;;  %v1083_v14 = vld [vmem:[#allocation2 + $0xd8] sm:$0xff]   ;;  %v1087_v18 = vld [vmem:[#allocation2 + $0xe0] sm:$0xff]   ;;  %v1090_v24 = vld [vmem:[#allocation2 + $0x28] sm:$0xff]  }
  0x1a   :  { %939 = vmatprep.subr.bf16.mxu0 %v1077_v8  ;;  %v1084_v15 = vld [vmem:[#allocation2 + $0x98] sm:$0xff]   ;;  %v1088_v19 = vld [vmem:[#allocation2 + $0xa0] sm:$0xff]   ;;  %v1091_v25 = vld [vmem:[#allocation2 + $0xe8] sm:$0xff]  }
  0x1b   :  { %960 = vmatpush3.bf16.msra.mxu1 %v1076_v7  ;;  %v1092_v26 = vld [vmem:[#allocation2 + $0xa8] sm:$0xff]   ;;  %v1093_v27 = vld [vmem:[#allocation2 + $0x70] sm:$0xff]   ;;  %v1097_v33 = vld [vmem:[#allocation2 + $0x78] sm:$0xff]  }
  0x1c   :  { %961 = vmatprep.subr.bf16.mxu1 %v1079_v10  ;;  %v1094_v30 = vld [vmem:[#allocation2 + $0x30] sm:$0xff]   ;;  %v1098_v35 = vld [vmem:[#allocation2 + $0x38] sm:$0xff]   ;;  %v40_v37 = vld [vmem:[%s1332_s0] sm:$0x3f] }
  0x1d   :  { %940 = vmatpush3.bf16.msra.mxu0 %v1078_v9  ;;  %v1095_v31 = vld [vmem:[#allocation2 + $0xf0] sm:$0xff]   ;;  %v1099_v36 = vld [vmem:[#allocation2 + $0xf8] sm:$0xff]   ;;  %v142_v38 = vcombine.high %v40_v37, %v40_v37  ;;  %v149_v39 = vrot.slane %v40_v37, %v148_v34  ;;  %v1102_v41 = vld [vmem:[#allocation2 + $0x140] sm:$0xff]  }
  0x1e   :  { %941 = vmatprep.subr.bf16.mxu0 %v1081_v12  ;;  %v1096_v32 = vld [vmem:[#allocation2 + $0xb0] sm:$0xff]   ;;  %v1101_v40 = vld [vmem:[#allocation2 + $0xb8] sm:$0xff]   ;;  %v1103_v46 = vld [vmem:[#allocation2 + $0x100] sm:$0xff]  }
  0x1f   :  { %962 = vmatpush3.bf16.msra.mxu1 %v1080_v11  ;;  %v157_v42 = vcombine.high %v149_v39, %v149_v39  ;;  %v165_v43 = vrot.slane %v149_v39, %v148_v34  ;;  %v156_v44 = vrot.slane %v142_v38, %v148_v34  ;;  %v1104_v49 = vld [vmem:[#allocation2 + $0x148] sm:$0xff]   ;;  %v1106_v53 = vld [vmem:[#allocation2 + $0x150] sm:$0xff]   ;;  %v1108_v55 = vld [vmem:[#allocation2 + $0x158] sm:$0xff]  }
  0x20   :  { %963 = vmatprep.subr.bf16.mxu1 %v1083_v14  ;;  %v1105_v52 = vld [vmem:[#allocation2 + $0x108] sm:$0xff]   ;;  %v1107_v54 = vld [vmem:[#allocation2 + $0x110] sm:$0xff]   ;;  %v1109_v56 = vld [vmem:[#allocation2 + $0x118] sm:$0xff]  }
  0x21   :  { %942 = vmatpush3.bf16.msra.mxu0 %v1082_v13  ;;  %v179_v45 = vrot.slane %v157_v42, %v148_v34  ;;  %v158_v47 = vcombine.high %v156_v44, %v156_v44  ;;  %v187_v48 = vcombine.high %v165_v43, %v165_v43  ;;  %v1110_v57 = vld [vmem:[#allocation2 + $0x160] sm:$0xff]   ;;  %v1112_v59 = vld [vmem:[#allocation2 + $0x168] sm:$0xff]   ;;  %v1114_v61 = vld [vmem:[#allocation2 + $0x170] sm:$0xff]   ;;  %v172_v1 = vrot.slane %v156_v44, %v148_v34 }
  0x22   :  { %943 = vmatprep.subr.bf16.mxu0 %v1085_v16  ;;  %v1111_v58 = vld [vmem:[#allocation2 + $0x120] sm:$0xff]   ;;  %v1113_v60 = vld [vmem:[#allocation2 + $0x128] sm:$0xff]   ;;  %v1115_v62 = vld [vmem:[#allocation2 + $0x130] sm:$0xff]  }
  0x23   :  { %964 = vmatpush3.bf16.msra.mxu1 %v1084_v15  ;;  %515 = vmatprep.mubr.bf16.mxu0 %v179_v45  ;;  %v188_v50 = vcombine.high %v179_v45, %v179_v45  ;;  %v186_v51 = vrot.slane %v158_v47, %v148_v34  ;;  %v1116_v63 = vld [vmem:[#allocation2 + $0x178] sm:$0xff]   ;;  %v1118_v2 = vld [vmem:[%s1334_s2] sm:$0xff]   ;;  %v1119_v4 = vld [vmem:[%s1334_s2 + $0x8] sm:$0xff]  }
  0x24   :  { %965 = vmatprep.subr.bf16.mxu1 %v1087_v18  ;;  %v1117_v0 = vld [vmem:[#allocation2 + $0x138] sm:$0xff]   ;;  %v1120_v5 = vld [vmem:[%s1334_s2 + $0x10] sm:$0xff]   ;;  %v1122_v7 = vld [vmem:[%s1334_s2 + $0x20] sm:$0xff]  }
  0x25   :  { %944 = vmatpush3.bf16.msra.mxu0 %v1086_v17  ;;  %555 = vmatprep.mubr.bf16.mxu1 %v188_v50  ;;  %v1121_v6 = vld [vmem:[%s1334_s2 + $0x18] sm:$0xff]   ;;  %v1123_v8 = vld [vmem:[%s1334_s2 + $0x28] sm:$0xff]   ;;  %v1124_v9 = vld [vmem:[%s1334_s2 + $0x30] sm:$0xff]   ;;  %v1188_v50 = vmov 0  }
  0x26   :  { %945 = vmatprep.subr.bf16.mxu0 %v1089_v20  ;;  %v1125_v10 = vld [vmem:[%s1334_s2 + $0x38] sm:$0xff]   ;;  %v1126_v11 = vld [vmem:[%s1335_s3] sm:$0xff]   ;;  %v1127_v12 = vld [vmem:[%s1335_s3 + $0x8] sm:$0xff]   ;;  %1067 = vset.pattern.permute.xlu0 %v1188_v50 }
  0x27   :  { %966 = vmatpush3.bf16.msra.mxu1 %v1088_v19  ;;  %v1128_v13 = vld [vmem:[%s1335_s3 + $0x10] sm:$0xff]   ;;  %v1129_v14 = vld [vmem:[%s1335_s3 + $0x18] sm:$0xff]   ;;  %v1130_v15 = vld [vmem:[%s1335_s3 + $0x20] sm:$0xff]   ;;  %1068 = vset.pattern.permute.xlu1 %v1188_v50 }
  0x28   :  { %967 = vmatprep.subr.bf16.mxu1 %v1091_v25  ;;  %v1131_v16 = vld [vmem:[%s1335_s3 + $0x28] sm:$0xff]   ;;  %v868_v18 = vld [vmem:[%s1336_s4] ss:$0 sm:$0xff]  ;;  %v917_v42 = vld [vmem:[%s1336_s4 + $0x1] ss:$0 sm:$0xff] }
  0x29   :  { %946 = vmatpush3.bf16.msra.mxu0 %v1090_v24 }
  0x2a   :  { %947 = vmatprep.subr.bf16.mxu0 %v1093_v27 }
  0x2b   :  { %968 = vmatpush3.bf16.msra.mxu1 %v1092_v26 }
  0x2c   :  { %969 = vmatprep.subr.bf16.mxu1 %v1095_v31 }
  0x2d   :  { %948 = vmatpush3.bf16.msra.mxu0 %v1094_v30 }
  0x2e   :  { %949 = vmatprep.subr.bf16.mxu0 %v1097_v33 }
  0x2f   :  { %970 = vmatpush3.bf16.msra.mxu1 %v1096_v32 }
  0x30   :  { %971 = vmatprep.subr.bf16.mxu1 %v1099_v36 }
  0x31   :  { %950 = vmatpush3.bf16.msra.mxu0 %v1098_v35 }
  0x32   :  { %979 = vmatprep.subr.bf16.mxu0 %v1102_v41  ;;  %v1133_v41 = vld [vmem:[%s1335_s3 + $0x38] sm:$0xff]  }
  0x33   :  { %972 = vmatpush3.bf16.msra.mxu1 %v1101_v40  ;;  %v1132_v40 = vld [vmem:[%s1335_s3 + $0x30] sm:$0xff]  }
  0x34   :  { %516 = vmatmul.mubr.bf16.vlgmr.msra.gmra.mrb[0].mxu0 %v165_v43  ;;  %1019 = vmatprep.subr.bf16.mxu1 %v1186_v3 }
  0x35   :  { %980 = vmatpush3.bf16.msra.mxu0 %v1103_v46  ;;  %595 = vmatprep.mubr.bf16.mxu0 %v186_v51  ;;  %v934_v51 = vld [vmem:[%s1336_s4 + $0x2] ss:$0 sm:$0xff] }
  0x36   :  { %556 = vmatmul.mubr.bf16.vlgmr.msra.gmra.mrb[0].mxu1 %v187_v48  ;;  %981 = vmatprep.subr.bf16.mxu0 %v1104_v49 }
  0x37   :  { %1020 = vmatpush3.bf16.msra.mxu1 %v1118_v2  ;;  %1035 = vmatprep.mubr.msk.bf16.mxu1 %vm1187_vm0, %v1186_v3  ;;  %v845_v2 = vand.u32 127, %v146_v23 }
  0x38   :  { %1021 = vmatprep.subr.bf16.mxu1 %v1186_v3 }
  0x39   :  { %982 = vmatpush3.bf16.msra.mxu0 %v1105_v52 }
  0x3a   :  { %983 = vmatprep.subr.bf16.mxu0 %v1106_v53 }
  0x3b   :  { %1022 = vmatpush3.bf16.msra.mxu1 %v1119_v4 }
  0x3c   :  { %1023 = vmatprep.subr.bf16.mxu1 %v1186_v3 }
  0x3d   :  { %984 = vmatpush3.bf16.msra.mxu0 %v1107_v54 }
  0x3e   :  { %985 = vmatprep.subr.bf16.mxu0 %v1108_v55 }
  0x3f   :  { %1024 = vmatpush3.bf16.msra.mxu1 %v1120_v5 }
  0x40   :  { %1025 = vmatprep.subr.bf16.mxu1 %v1186_v3 }
  0x41   :  { %986 = vmatpush3.bf16.msra.mxu0 %v1109_v56 }
  0x42   :  { %987 = vmatprep.subr.bf16.mxu0 %v1110_v57 }
  0x43   :  { %1026 = vmatpush3.bf16.msra.mxu1 %v1121_v6 }
  0x44   :  { %1027 = vmatprep.subr.bf16.mxu1 %v1186_v3 }
  0x45   :  { %988 = vmatpush3.bf16.msra.mxu0 %v1111_v58 }
  0x46   :  { %989 = vmatprep.subr.bf16.mxu0 %v1112_v59  ;;  %v39_v59 = vld [vmem:[%s1336_s4 + $0x3] sm:$0x1]  ;;  %s1156_s4 = scalar_lea.vmem %s860_s19, 16 }
  0x47   :  { %1028 = vmatpush3.bf16.msra.mxu1 %v1122_v7  ;;  %p1157_p8 = scmp.ne.s32.totalorder %s860_s19, %s1156_s4  ;;  %p1162_p10 = scmp.lt.s32.totalorder %s1160_s20, %s1156_s4 }
  0x48   :  { %1029 = vmatprep.subr.bf16.mxu1 %v1186_v3 }
  0x49   :  { %990 = vmatpush3.bf16.msra.mxu0 %v1113_v60  ;;  %p1163_p11 = por %p1162_p10, %p1161_p9 }
  0x4a   :  { %991 = vmatprep.subr.bf16.mxu0 %v1114_v61  ;;  %v836_v61 = vsub.s32 0, %v1233_v29 }
  0x4b   :  { %1030 = vmatpush3.bf16.msra.mxu1 %v1123_v8  ;;  %p1164_p12 = pnand %p1163_p11, %p1157_p8 }
  0x4c   :  { %1031 = vmatprep.subr.bf16.mxu1 %v1186_v3 }
  0x4d   :  { %992 = vmatpush3.bf16.msra.mxu0 %v1115_v62 }
  0x4e   :  { %993 = vmatprep.subr.bf16.mxu0 %v1116_v63 }
  0x4f   :  { %1032 = vmatpush3.bf16.msra.mxu1 %v1124_v9 }
  0x50   :  { %1033 = vmatprep.subr.bf16.mxu1 %v1186_v3 }
  0x51   :  { %994 = vmatpush3.bf16.msra.mxu0 %v1117_v0 }
  0x52   :  { %1039 = vmatprep.subr.bf16.mxu0 %v1186_v3 }
  0x53   :  { %1034 = vmatpush3.bf16.msra.mxu1 %v1125_v10 }
  0x54   :  { %596 = vmatmul.mubr.bf16.vlgmr.msra.gmra.mrb[4].mxu0 %v172_v1 }
  0x55   :  { %1055 = vmatprep.mubr.msk.bf16.mxu0 %vm1187_vm0, %v1186_v3  ;;  %1040 = vmatpush3.bf16.msra.mxu0 %v1126_v11 }
  0x56   :  { %1041 = vmatprep.subr.bf16.mxu0 %v1186_v3 }
  0x59   :  { %1042 = vmatpush3.bf16.msra.mxu0 %v1127_v12 }
  0x5a   :  { %1043 = vmatprep.subr.bf16.mxu0 %v1186_v3 }
  0x5d   :  { %1044 = vmatpush3.bf16.msra.mxu0 %v1128_v13 }
  0x5e   :  { %1045 = vmatprep.subr.bf16.mxu0 %v1186_v3 }
  0x61   :  { %1046 = vmatpush3.bf16.msra.mxu0 %v1129_v14 }
  0x62   :  { %1047 = vmatprep.subr.bf16.mxu0 %v1186_v3 }
  0x65   :  { %1048 = vmatpush3.bf16.msra.mxu0 %v1130_v15 }
  0x66   :  { %1049 = vmatprep.subr.bf16.mxu0 %v1186_v3 }
  0x69   :  { %1050 = vmatpush3.bf16.msra.mxu0 %v1131_v16 }
  0x6a   :  { %1051 = vmatprep.subr.bf16.mxu0 %v1186_v3 }
  0x6d   :  { %1052 = vmatpush3.bf16.msra.mxu0 %v1132_v40 }
  0x6e   :  { %1053 = vmatprep.subr.bf16.mxu0 %v1186_v3  ;;  %v848_v3 = vsub.s32 %v845_v2, %v1233_v29 }
  0x71   :  { %1054 = vmatpush3.bf16.msra.mxu0 %v1133_v41 }
 0x107   :  { %v951_v17 = vpop.f32.mrb[0].mxu0 }
 0x108   :  { %v952_v19 = vpop.f32.mrb[1].mxu0 }
 0x109   :  { %v953_v20 = vadd.f32 %v952_v19, %v951_v17  ;;  %v954_v21 = vpop.f32.mrb[2].mxu0  ;;  %v973_v22 = vpop.f32.mrb[0].mxu1 }
 0x10a   :  { %v955_v24 = vpop.f32.mrb[3].mxu0  ;;  %v974_v25 = vpop.f32.mrb[1].mxu1 }
 0x10b   :  { %v518_v26 = vadd.f32 %v953_v20, %v868_v18  ;;  %v975_v27 = vadd.f32 %v974_v25, %v973_v22  ;;  %v976_v28 = vpop.f32.mrb[2].mxu1 }
 0x10c   :  { %v977_v30 = vpop.f32.mrb[3].mxu1 }
 0x10d   :  { %v558_v31 = vadd.f32 %v975_v27, %v518_v26 }
 0x127   :  { %v995_v32 = vpop.f32.mrb[4].mxu0 }
 0x128   :  { %v996_v33 = vpop.f32.mrb[5].mxu0 }
 0x129   :  { %v997_v34 = vadd.f32 %v996_v33, %v995_v32  ;;  %v998_v35 = vpop.f32.mrb[6].mxu0 }
 0x12a   :  { %v999_v36 = vpop.f32.mrb[7].mxu0 }
 0x12b   :  { %v598_v37 = vadd.f32 %v997_v34, %v558_v31 }
 0x12d   :  { %v603_v38 = vmax.f32 %v598_v37, 0.0 }
 0x12f   :  { %v604_v39 = vpack.c.bf16 %v603_v38, %v603_v38 }
 0x131   :  { %1036 = vmatmul.mubr.bf16.vlgmr.msra.gmra.mrb[4].mxu1 %v604_v39 }
 0x204   :  { %v707_v43 = vpop.f32.mrb[4].mxu1 }
 0x205   :  { %v708_v44 = vadd.f32 %v917_v42, %v707_v43  ;;  %v1037_v45 = vpop.f32.mrb[5].mxu1 }
 0x206   :  { %v710_v46 = vpop.f32.mrb[6].mxu1 }
 0x207   :  { %v713_v47 = vmax.f32 %v708_v44, 0.0  ;;  %v1038_v48 = vpop.f32.mrb[7].mxu1 }
 0x209   :  { %v714_v49 = vpack.c.bf16 %v713_v47, %v713_v47 }
 0x20b   :  { %1056 = vmatmul.mubr.bf16.vlgmr.msra.gmra.mrb[8].mxu0 %v714_v49 }
 0x2de   :  { %v813_v52 = vpop.f32.mrb[8].mxu0 }
 0x2df   :  { %v823_v53 = vsub.f32 %v813_v52, %v934_v51  ;;  %v1057_v54 = vpop.f32.mrb[9].mxu0 }
 0x2e0   :  { %v816_v55 = vpop.f32.mrb[10].mxu0 }
 0x2e1   :  { %v824_v56 = vmul.f32 %v823_v53, %v823_v53  ;;  %v1058_v57 = vpop.f32.mrb[11].mxu0 }
 0x2e3   :  { %v826_v58 = vsel %vm825_vm1, %v824_v56, 0.0 }
 0x2e4   :  { %827 = vadd.xlane.f32.xlu0 %v826_v58 }
 0x2fa   :  { %832 = vperm.xlu0 %1067, %v39_v59  }
 0x371   :  { %v828_v60 = vpop.xlane.xlu0 %827 }
 0x372   :  { %v829_v63 = vmul.f32 -0.5, %v828_v60 }
 0x379   :  { %v833_v62 = vpop.permute.xlu0 %832 }
 0x37a   :  { %v837_v0 = vrot.slane %v833_v62, %v836_v61 }
 0x37c   :  { %v839_v1 = vadd.f32 %v837_v0, %v829_v63 }
 0x37e   :  { %842 = vperm.xlu1 %1068, %v839_v1  }
 0x3fd   :  { %v843_v4 = vpop.permute.xlu1 %842 }
 0x3fe   :  { %v849_v5 = vrot.slane %v843_v4, %v848_v3 }
 0x400   :  { %852 = vst.msk [vmem:[#allocation5] sm:$0x1] %vm851_vm2, %v849_v5 }
 0x401   :  { %1167 = shalt.err (!%p1164_p12)
}
 0x402   :  { %s1168_s23 = scalar_lea.hbm %s1337_s5, 16 }
 0x403   :  { %p1169_p13 = scmp.ne.s32.totalorder %s1337_s5, %s1168_s23  ;;  %p1172_p0 = scmp.lt.u32.totalorder %s1168_s23, %s1337_s5 }
 0x405   :  { %p1174_p1 = pnand %p1172_p0, %p1169_p13 }
 0x407   :  { %1177 = shalt.err (!%p1174_p1)
}
 0x408   :  { %862 = dma.vmem_to_hbm [thread:$0]  %s860_s19, 16, %s1337_s5, [#allocation4]  }
 0x409   :  { %1180 = dma.done.wait [#allocation4], 16  }
 0x40a   :  { %1181 = vsyncadd [#allocation4], 4294967280 }
 0x40b   :  { %866 = vsyncpa [#allocation3], 1 }
 0x40c   :  { %867 = vsyncpa [#allocation4], 1 }

</bundles_post_ra>
